<compile_context>
chip_gen: v5e
topology: v5e:2x2
jax: 0.10.0
libtpu: 0.0.40
codegen_flags: <defaults>
</compile_context>

<pallas_src>
import jax
import jax.numpy as jnp
from jax.experimental import pallas as pl
from jax.experimental.pallas import tpu as pltpu

BN_EPS = 1e-5


def mlp_kernel(x_ref, w1_ref, g_ref, be_ref, w2_ref, b2_ref, o_ref, acc_ref):
    """One hidden-tile step of the fused MLP forward.

    x_ref : [B, d_in]      (resident across the whole grid)
    w1_ref: [d_in, tH]     (hidden tile of Linear-1 weight, pre-transposed)
    g_ref : [1, tH]        (BN gamma tile)
    be_ref: [1, tH]        (BN beta tile)
    w2_ref: [tH, d_out]    (hidden tile of Linear-2 weight, pre-transposed)
    b2_ref: [1, d_out]     (Linear-2 bias)
    o_ref : [B, d_out]     (written once, at the last tile)
    acc_ref: VMEM scratch [B, d_out] f32 accumulator
    """
    j = pl.program_id(0)

    @pl.when(j == 0)
    def _():
        acc_ref[...] = jnp.zeros_like(acc_ref)

    # Linear 1 (no bias): [B, d_in] @ [d_in, tH] -> [B, tH] on the MXU.
    h = jnp.dot(x_ref[...], w1_ref[...], preferred_element_type=jnp.float32)

    # BatchNorm1d (training mode): per-feature biased stats over the batch
    # (sublane) axis, computed in a single sweep (sum + sum-of-squares).
    inv_b = jnp.float32(1.0 / h.shape[0])
    mean = jnp.sum(h, axis=0, keepdims=True) * inv_b
    var = jnp.sum(h * h, axis=0, keepdims=True) * inv_b - mean * mean

    # Fold normalize + affine into one per-channel scale/shift FMA, then ReLU.
    # rsqrt goes to the EUP (separate issue slot) -> effectively free.
    scale = g_ref[...] * jax.lax.rsqrt(var + BN_EPS)
    shift = be_ref[...] - mean * scale
    a = jnp.maximum(h * scale + shift, 0.0)

    # Linear 2: accumulate this hidden tile's partial product on the MXU.
    acc_ref[...] += jnp.dot(
        a.astype(w2_ref.dtype), w2_ref[...], preferred_element_type=jnp.float32
    )

    @pl.when(j == pl.num_programs(0) - 1)
    def _():
        o_ref[...] = (acc_ref[...] + b2_ref[...]).astype(o_ref.dtype)


def mlp_forward(x, w1, gamma, beta, w2, b2, *, hidden_tile=512):
    """x: [B, d_in]; w1: [d_in, hidden]; gamma/beta: [1, hidden];
    w2: [hidden, d_out]; b2: [1, d_out]."""
    B, d_in = x.shape
    hidden = w1.shape[1]
    d_out = w2.shape[1]

    tH = min(hidden_tile, hidden)
    assert hidden % tH == 0, "hidden must be divisible by hidden_tile"
    assert tH % 128 == 0, "hidden tile must be a multiple of 128 lanes"
    grid = (hidden // tH,)

    return pl.pallas_call(
        mlp_kernel,
        out_shape=jax.ShapeDtypeStruct((B, d_out), x.dtype),
        grid_spec=pltpu.PrefetchScalarGridSpec(
            num_scalar_prefetch=0,
            grid=grid,
            in_specs=[
                pl.BlockSpec((B, d_in), lambda j: (0, 0)),     # x (resident)
                pl.BlockSpec((d_in, tH), lambda j: (0, j)),    # W1 tile
                pl.BlockSpec((1, tH), lambda j: (0, j)),       # gamma tile
                pl.BlockSpec((1, tH), lambda j: (0, j)),       # beta tile
                pl.BlockSpec((tH, d_out), lambda j: (j, 0)),   # W2 tile
                pl.BlockSpec((1, d_out), lambda j: (0, 0)),    # bias
            ],
            out_specs=pl.BlockSpec((B, d_out), lambda j: (0, 0)),
            scratch_shapes=[pltpu.VMEM((B, d_out), jnp.float32)],
        ),
        compiler_params=pltpu.CompilerParams(
            # Hidden-tile axis is a reduction for the second matmul
            # (output accumulator revisited every step).
            dimension_semantics=("arbitrary",),
            # Headroom for double-buffered weight tiles at the default
            # module sizes (2048/4096/256) without re-tuning tile size.
            vmem_limit_bytes=64 << 20,
        ),
    )(x, w1, gamma, beta, w2, b2)


def mlp_reference(x, w1, gamma, beta, w2, b2):
    """Pure-JAX reference of the PyTorch forward (training-mode BN)."""
    h = x @ w1
    mean = jnp.mean(h, axis=0, keepdims=True)
    var = jnp.mean(jnp.square(h - mean), axis=0, keepdims=True)
    a = jnp.maximum((h - mean) * jax.lax.rsqrt(var + BN_EPS) * gamma + beta, 0.0)
    return a @ w2 + b2


if __name__ == "__main__":
    # Small shapes consistent with the module (defaults are 2048/4096/256),
    # scaled down but kept TPU-tile friendly.
    B, D_IN, HIDDEN, D_OUT = 16, 128, 512, 128

    key = jax.random.PRNGKey(0)
    kx, kw1, kg, kbe, kw2, kb2 = jax.random.split(key, 6)

    x = jax.random.normal(kx, (B, D_IN), jnp.float32)

    # Linear(d_in, hidden, bias=False).weight is [hidden, d_in] in PyTorch;
    # stored here pre-transposed as [d_in, hidden] for the matmul layout.
    bound1 = 1.0 / jnp.sqrt(jnp.float32(D_IN))
    w1 = jax.random.uniform(kw1, (D_IN, HIDDEN), jnp.float32, -bound1, bound1)

    # BatchNorm affine params (perturbed from the default init so the fused
    # scale/shift path is actually exercised).
    gamma = 1.0 + 0.1 * jax.random.normal(kg, (1, HIDDEN), jnp.float32)
    beta = 0.1 * jax.random.normal(kbe, (1, HIDDEN), jnp.float32)

    # Linear(hidden, d_out, bias=True): weight [d_out, hidden] -> [hidden, d_out].
    bound2 = 1.0 / jnp.sqrt(jnp.float32(HIDDEN))
    w2 = jax.random.uniform(kw2, (HIDDEN, D_OUT), jnp.float32, -bound2, bound2)
    b2 = jax.random.uniform(kb2, (1, D_OUT), jnp.float32, -bound2, bound2)

    out = mlp_forward(x, w1, gamma, beta, w2, b2, hidden_tile=256)  # grid = (2,)
    out = jax.block_until_ready(out)

    ref = mlp_reference(x, w1, gamma, beta, w2, b2)
    assert out.shape == (B, D_OUT), out.shape
    assert jnp.allclose(out, ref, atol=1e-4, rtol=1e-4), "mismatch vs reference"

    print("KERNEL_OK")
</pallas_src>

<mosaic_0001>
module attributes {stable_mosaic.version = 11 : i64} {
  func.func @mlp_kernel(%arg0: i32, %arg1: memref<16x128xf32, #tpu.memory_space<vmem>>, %arg2: memref<128x256xf32, #tpu.memory_space<vmem>>, %arg3: memref<1x256xf32, #tpu.memory_space<vmem>>, %arg4: memref<1x256xf32, #tpu.memory_space<vmem>>, %arg5: memref<256x128xf32, #tpu.memory_space<vmem>>, %arg6: memref<1x128xf32, #tpu.memory_space<vmem>>, %arg7: memref<16x128xf32, #tpu.memory_space<vmem>>, %arg8: memref<16x128xf32, #tpu.memory_space<vmem>>) attributes {dimension_semantics = [#tpu.dimension_semantics<arbitrary>], iteration_bounds = array<i64: 2>, scalar_prefetch = 0 : i64, scratch_operands = 1 : i64, tpu.core_type = #tpu.core_type<tc>, window_params = [{pipeline_mode = #tpu.pipeline_mode<synchronous>, transform_indices = @transform_0, window_bounds = array<i64: 16, 128>}, {transform_indices = @transform_1, window_bounds = array<i64: 128, 256>}, {transform_indices = @transform_2, window_bounds = array<i64: 1, 256>}, {transform_indices = @transform_3, window_bounds = array<i64: 1, 256>}, {transform_indices = @transform_4, window_bounds = array<i64: 256, 128>}, {pipeline_mode = #tpu.pipeline_mode<synchronous>, transform_indices = @transform_5, window_bounds = array<i64: 1, 128>}, {pipeline_mode = #tpu.pipeline_mode<synchronous>, transform_indices = @transform_6, window_bounds = array<i64: 16, 128>}]} {
    %c0_i32 = arith.constant 0 : i32
    %0 = arith.cmpi eq, %arg0, %c0_i32 : i32
    %1 = arith.extui %0 : i1 to i32
    %c0_i32_0 = arith.constant 0 : i32
    %2 = arith.cmpi ne, %1, %c0_i32_0 : i32
    scf.if %2 {
      %cst_22 = arith.constant 0.000000e+00 : f32
      %39 = vector.broadcast %cst_22 : f32 to vector<16x128xf32>
      %c0_23 = arith.constant 0 : index
      %c0_24 = arith.constant 0 : index
      %40 = vector.load %arg8[%c0_23, %c0_24] : memref<16x128xf32, #tpu.memory_space<vmem>>, vector<16x128xf32>
      tpu.vector_store %arg8[%c0_23, %c0_24], %39 {strides = array<i32>} : memref<16x128xf32, #tpu.memory_space<vmem>>, vector<16x128xf32>,
    } else {
    }
    %c0 = arith.constant 0 : index
    %c0_1 = arith.constant 0 : index
    %3 = vector.load %arg1[%c0, %c0_1] : memref<16x128xf32, #tpu.memory_space<vmem>>, vector<16x128xf32>
    %c0_2 = arith.constant 0 : index
    %c0_3 = arith.constant 0 : index
    %4 = vector.load %arg2[%c0_2, %c0_3] : memref<128x256xf32, #tpu.memory_space<vmem>>, vector<128x256xf32>
    %cst = arith.constant dense<0.000000e+00> : vector<16x256xf32>
    %5 = tpu.matmul %3, %4, %cst {dimension_numbers = #tpu.dot_dimension_numbers<[1], [0], [0], [1], [0, 0, 1, 1], [], []>} : vector<16x128xf32>, vector<128x256xf32>, vector<16x256xf32> -> vector<16x256xf32>
    %cst_4 = arith.constant dense<0.000000e+00> : vector<256xf32>
    %6 = vector.multi_reduction <add>, %5, %cst_4 [0] : vector<16x256xf32> to vector<256xf32>
    %7 = vector.shape_cast %6 : vector<256xf32> to vector<1x256xf32>
    %cst_5 = arith.constant 6.250000e-02 : f32
    %8 = vector.broadcast %cst_5 : f32 to vector<1x256xf32>
    %9 = arith.mulf %7, %8 : vector<1x256xf32>
    %10 = arith.mulf %5, %5 : vector<16x256xf32>
    %cst_6 = arith.constant dense<0.000000e+00> : vector<256xf32>
    %11 = vector.multi_reduction <add>, %10, %cst_6 [0] : vector<16x256xf32> to vector<256xf32>
    %12 = vector.shape_cast %11 : vector<256xf32> to vector<1x256xf32>
    %cst_7 = arith.constant 6.250000e-02 : f32
    %13 = vector.broadcast %cst_7 : f32 to vector<1x256xf32>
    %14 = arith.mulf %12, %13 : vector<1x256xf32>
    %15 = arith.mulf %9, %9 : vector<1x256xf32>
    %16 = arith.subf %14, %15 : vector<1x256xf32>
    %c0_8 = arith.constant 0 : index
    %c0_9 = arith.constant 0 : index
    %17 = vector.load %arg3[%c0_8, %c0_9] : memref<1x256xf32, #tpu.memory_space<vmem>>, vector<1x256xf32>
    %cst_10 = arith.constant 9.99999974E-6 : f32
    %18 = vector.broadcast %cst_10 : f32 to vector<1x256xf32>
    %19 = arith.addf %16, %18 : vector<1x256xf32>
    %20 = math.rsqrt %19 : vector<1x256xf32>
    %21 = arith.mulf %17, %20 : vector<1x256xf32>
    %c0_11 = arith.constant 0 : index
    %c0_12 = arith.constant 0 : index
    %22 = vector.load %arg4[%c0_11, %c0_12] : memref<1x256xf32, #tpu.memory_space<vmem>>, vector<1x256xf32>
    %23 = arith.mulf %9, %21 : vector<1x256xf32>
    %24 = arith.subf %22, %23 : vector<1x256xf32>
    %25 = vector.broadcast %21 : vector<1x256xf32> to vector<16x256xf32>
    %26 = arith.mulf %5, %25 : vector<16x256xf32>
    %27 = vector.broadcast %24 : vector<1x256xf32> to vector<16x256xf32>
    %28 = arith.addf %26, %27 : vector<16x256xf32>
    %cst_13 = arith.constant 0.000000e+00 : f32
    %29 = vector.broadcast %cst_13 : f32 to vector<16x256xf32>
    %30 = arith.maximumf %28, %29 : vector<16x256xf32>
    %c0_14 = arith.constant 0 : index
    %c0_15 = arith.constant 0 : index
    %31 = vector.load %arg8[%c0_14, %c0_15] : memref<16x128xf32, #tpu.memory_space<vmem>>, vector<16x128xf32>
    %c0_16 = arith.constant 0 : index
    %c0_17 = arith.constant 0 : index
    %32 = vector.load %arg5[%c0_16, %c0_17] : memref<256x128xf32, #tpu.memory_space<vmem>>, vector<256x128xf32>
    %cst_18 = arith.constant dense<0.000000e+00> : vector<16x128xf32>
    %33 = tpu.matmul %30, %32, %cst_18 {dimension_numbers = #tpu.dot_dimension_numbers<[1], [0], [0], [1], [0, 0, 1, 1], [], []>} : vector<16x256xf32>, vector<256x128xf32>, vector<16x128xf32> -> vector<16x128xf32>
    %34 = arith.addf %31, %33 : vector<16x128xf32>
    %c0_19 = arith.constant 0 : index
    %c0_20 = arith.constant 0 : index
    %35 = vector.load %arg8[%c0_19, %c0_20] : memref<16x128xf32, #tpu.memory_space<vmem>>, vector<16x128xf32>
    tpu.vector_store %arg8[%c0_19, %c0_20], %34 {strides = array<i32>} : memref<16x128xf32, #tpu.memory_space<vmem>>, vector<16x128xf32>,
    %c1_i32 = arith.constant 1 : i32
    %36 = arith.cmpi eq, %arg0, %c1_i32 : i32
    %37 = arith.extui %36 : i1 to i32
    %c0_i32_21 = arith.constant 0 : i32
    %38 = arith.cmpi ne, %37, %c0_i32_21 : i32
    scf.if %38 {
      %c0_22 = arith.constant 0 : index
      %c0_23 = arith.constant 0 : index
      %39 = vector.load %arg8[%c0_22, %c0_23] : memref<16x128xf32, #tpu.memory_space<vmem>>, vector<16x128xf32>
      %c0_24 = arith.constant 0 : index
      %c0_25 = arith.constant 0 : index
      %40 = vector.load %arg6[%c0_24, %c0_25] : memref<1x128xf32, #tpu.memory_space<vmem>>, vector<1x128xf32>
      %41 = vector.broadcast %40 : vector<1x128xf32> to vector<16x128xf32>
      %42 = arith.addf %39, %41 : vector<16x128xf32>
      %c0_26 = arith.constant 0 : index
      %c0_27 = arith.constant 0 : index
      %43 = vector.load %arg7[%c0_26, %c0_27] : memref<16x128xf32, #tpu.memory_space<vmem>>, vector<16x128xf32>
      tpu.vector_store %arg7[%c0_26, %c0_27], %42 {strides = array<i32>} : memref<16x128xf32, #tpu.memory_space<vmem>>, vector<16x128xf32>,
    } else {
    }
    return
  }
  func.func @transform_0(%arg0: i32) -> (i32, i32) {
    %c0_i32 = arith.constant 0 : i32
    %c0_i32_0 = arith.constant 0 : i32
    %c0_i32_1 = arith.constant 0 : i32
    return %c0_i32, %c0_i32_0 : i32, i32
  }
  func.func @transform_1(%arg0: i32) -> (i32, i32) {
    %c0_i32 = arith.constant 0 : i32
    %c0_i32_0 = arith.constant 0 : i32
    return %c0_i32, %arg0 : i32, i32
  }
  func.func @transform_2(%arg0: i32) -> (i32, i32) {
    %c0_i32 = arith.constant 0 : i32
    %c0_i32_0 = arith.constant 0 : i32
    return %c0_i32, %arg0 : i32, i32
  }
  func.func @transform_3(%arg0: i32) -> (i32, i32) {
    %c0_i32 = arith.constant 0 : i32
    %c0_i32_0 = arith.constant 0 : i32
    return %c0_i32, %arg0 : i32, i32
  }
  func.func @transform_4(%arg0: i32) -> (i32, i32) {
    %c0_i32 = arith.constant 0 : i32
    %c0_i32_0 = arith.constant 0 : i32
    return %arg0, %c0_i32 : i32, i32
  }
  func.func @transform_5(%arg0: i32) -> (i32, i32) {
    %c0_i32 = arith.constant 0 : i32
    %c0_i32_0 = arith.constant 0 : i32
    %c0_i32_1 = arith.constant 0 : i32
    return %c0_i32, %c0_i32_0 : i32, i32
  }
  func.func @transform_6(%arg0: i32) -> (i32, i32) {
    %c0_i32 = arith.constant 0 : i32
    %c0_i32_0 = arith.constant 0 : i32
    %c0_i32_1 = arith.constant 0 : i32
    return %c0_i32, %c0_i32_0 : i32, i32
  }
}

</mosaic_0001>

<bundles_post_ra>
// kernel: tpu_custom_call.1
= control target key start
LH: loop header
LB: loop body
LE: loop exit
PB: predicated region body
PF: predicated region fallthrough
CT: control target
= control target key end

     0   :  { %s1506_s0 = inlined_call_operand.hbm [shape: f32[16,128], index: 0, kind: input, shape index: {}]   ;;  %s1507_s1 = inlined_call_operand.hbm [shape: f32[128,512], index: 1, kind: input, shape index: {}]   ;;  %s1508_s2 = inlined_call_operand.hbm [shape: f32[1,512], index: 2, kind: input, shape index: {}]   ;;  %s1509_s3 = inlined_call_operand.hbm [shape: f32[1,512], index: 3, kind: input, shape index: {}]   ;;  %s1510_s4 = inlined_call_operand.hbm [shape: f32[512,128], index: 4, kind: input, shape index: {}]   ;;  %s1511_s5 = inlined_call_operand.vmem [shape: f32[1,128], index: 5, kind: input, shape index: {}]   ;;  %s1512_s6 = inlined_call_operand.hbm [shape: f32[16,128], index: 6, kind: output, shape index: {}]  }
   0x1   :  { %1517 = sst [smem:[#allocation20_spill]] %s1507_s1 }
   0x2   :  { %11 = vsyncpa [#allocation4], 0 }
   0x3   :  { %12 = vsyncpa [#allocation7], 0 }
   0x4   :  { %14 = vsyncpa [#allocation7 + $0x1], 0 }
   0x5   :  { %15 = vsyncpa [#allocation10], 0 }
   0x6   :  { %17 = vsyncpa [#allocation10 + $0x1], 0 }
   0x7   :  { %18 = vsyncpa [#allocation5], 0  ;;  %s1200_s21 = smov 0   ;;  %s1202_s22 = smov 0  }
   0x8   :  { %s1204_s23 = smov 0   ;;  %s1206_s24 = smov 0  }
   0x9 LB: > { %1518 = sst [smem:[#allocation17_spill]] %s1149_s23  ;;  %s1221_s25 = sadd.s32 1, %s1153_s24   ;;  %s1153_s24 = sphi %s1206_s24, %s1526_s24   ;;  %s1149_s23 = sphi %s1204_s23, %s1528_s23   ;;  %s1145_s22 = sphi %s1202_s22, %s1530_s22   ;;  %s1141_s21 = sphi %s1200_s21, %s1529_s21  }
   0xa   : > { %1519 = sst [smem:[#allocation18_spill]] %s1221_s25  ;;  %s52_s26 = sadd.s32 1, %s1149_s23 }
   0xb   : > { %s49_s27 = ssub.s32 %s1153_s24, %s1221_s25  ;;  %p59_p0 = scmp.ne.s32.totalorder %s1149_s23, %s1145_s22 }
   0xc   : > { %p50_p1 = scmp.eq.s32.totalorder %s49_s27, 0  ;;  %p60_p2 = scmp.eq.s32.totalorder %s1153_s24, 0 }
   0xd   : > { %p878_p3 = scmp.lt.s32.totalorder %s1153_s24, 2  ;;  %s1513_s29 = sand.u32 1, %s1153_s24  }
   0xe   : > { %s1231_s28 = scalar_select %p50_p1, %s1149_s23, %s52_s26  }
   0xf   : > { %p61_p4 = por %p60_p2, %p59_p0  ;;  %s228_s30 = sand.u32 1, %s1149_s23  }
  0x10   : > { %1520 = sst [smem:[#allocation19_spill]] %s1231_s28  ;;  %s1235_s7 = sshll.u32 %s228_s30, 8 }
  0x11   : > { %s842_s8 = sshll.u32 %s1153_s24, 4  ;;  %s1521_s1 = sld [smem:[#allocation20_spill]] }
  0x12   : > { %s230_s13 = scalar_lea.vmem [#allocation6], %s1235_s7  ;;  %p1244_p5 = pnand %p878_p3, %p61_p4 }
  0x13   : > { %s238_s14 = sshll.u32 %s230_s13, 4  ;;  %s1248_s16 = sshll.u32 %s228_s30, 1  ;;  %s239_s14 = int_to_ptr.vmem [resolvable:$true] %s238_s14 }
  0x14   : > { %s1252_s17 = scalar_lea.sflag [#allocation7], %s1513_s29  ;;  %p933_p7 = pneg %p1244_p5 }
  0x17   : > { %s235_s11 = scalar_lea.hbm %s1521_s1, %s842_s8  ;;  %s936_s27 = scalar_lea.hbm %s1521_s1, 512 }
  0x18   : > { %s236_s12 = sshll.u32 %s235_s11, 4  ;;  %s237_s12 = int_to_ptr.hbm [resolvable:$true] %s236_s12 }
  0x19   : > { %s929_s18 = sshra.s32 %s237_s12, 4  ;;  %s930_s18 = int_to_ptr.hbm [resolvable:$true] %s929_s18 }
  0x1a   : > { %s931_s19 = scalar_lea.hbm %s930_s18, 256  ;;  %p937_p10 = scmp.lt.s32.totalorder %s930_s18, %s1521_s1 }
  0x1b   : > { %p932_p6 = scmp.ne.s32.totalorder %s930_s18, %s931_s19  ;;  %p938_p11 = scmp.lt.s32.totalorder %s936_s27, %s931_s19 }
  0x1d   : > { %p934_p8 = pnand %p933_p7, %p932_p6  ;;  %p939_p12 = por %p938_p11, %p937_p10 }
  0x1f   : > { %p935_p9 = pneg %p934_p8 }
  0x21   : > { %p940_p13 = pnand %p939_p12, %p935_p9 }
  0x23   : > { %943 = shalt.err (!%p940_p13)
}
  0x24   : > { %s1155_s9 = smov 512   ;;  %s1156_s10 = smov 256  }
  0x25   : > { %s1157_s11 = smov 16   ;;  %s824_s13 = sshll.u32 %s1153_s24, 1 }
  0x26   : > { %867 = dma.hbm_to_vmem [thread:$0]  (!%p1244_p5), %s237_s12, 4096, %s239_s14, %s1252_s17, %s1155_s9, %s1156_s10, %s1157_s11  }
  0x27   : > { %s1272_s18 = scalar_lea.hbm %s1508_s2, %s824_s13  ;;  %s275_s8 = scalar_lea.hbm %s1509_s3, %s824_s13 }
  0x28   : > { %s277_s30 = sshll.u32 %s275_s8, 4  ;;  %s271_s29 = scalar_lea.vmem [#allocation9], %s1248_s16  ;;  %s278_s30 = int_to_ptr.hbm [resolvable:$true] %s277_s30 }
  0x29   : > { %s279_s1 = sshll.u32 %s271_s29, 4  ;;  %s1523_s28 = sand.u32 1, %s1153_s24   ;;  %s280_s1 = int_to_ptr.vmem [resolvable:$true] %s279_s1 }
  0x2a   : > { %s1280_s23 = scalar_lea.sflag [#allocation10], %s1523_s28  ;;  %s959_s25 = sshra.s32 %s278_s30, 4  ;;  %s960_s25 = int_to_ptr.hbm [resolvable:$true] %s959_s25 }
  0x2b   : > { %s961_s12 = scalar_lea.hbm %s960_s25, 2  ;;  %s966_s10 = scalar_lea.hbm %s1509_s3, 4 }
  0x2c   : > { %p962_p0 = scmp.ne.s32.totalorder %s960_s25, %s961_s12  ;;  %p967_p3 = scmp.lt.s32.totalorder %s960_s25, %s1509_s3 }
  0x2d   : > { %p968_p4 = scmp.lt.s32.totalorder %s966_s10, %s961_s12 }
  0x2e   : > { %p964_p1 = pnand %p962_p0, %p933_p7 }
  0x2f   : > { %p969_p6 = por %p968_p4, %p967_p3 }
  0x30   : > { %p965_p2 = pneg %p964_p1 }
  0x32   : > { %p970_p8 = pnand %p969_p6, %p965_p2 }
  0x34   : > { %973 = shalt.err (!%p970_p8)
}
  0x35   : > { %873 = dma.hbm_to_vmem [thread:$0]  (!%p1244_p5), %s278_s30, 32, %s280_s1, %s1280_s23  }
  0x36   : > { %s1295_s28 = sadd.s32 4294967295, %s1153_s24   ;;  %p65_p10 = scmp.ne.s32.totalorder %s1145_s22, %s1141_s21 }
  0x37   : > { %p66_p9 = scmp.eq.s32.totalorder %s1295_s28, 0  ;;  %p817_p11 = scmp.ge.s32.totalorder %s1153_s24, 1 }
  0x38   : > { %p196_p12 = scmp.lt.s32.totalorder %s1153_s24, 3  ;;  %p818_p13 = scmp.ne.s32.totalorder %s1295_s28, 0 }
  0x39   : > { %p1305_p0 = por %p66_p9, %p65_p10  ;;  %s207_s20 = sshll.u32 %s1506_s0, 4  ;;  %s208_s20 = int_to_ptr.hbm [resolvable:$true] %s207_s20 }
  0x3a   : > { %p1312_p1 = pnand %p817_p11, %p196_p12  ;;  %s1158_s21 = smov [#allocation3]  }
  0x3b   : > { %s209_s19 = sshll.u32 %s1158_s21, 4  ;;  %s258_s27 = sshll.u32 %s1272_s18, 4  ;;  %s210_s19 = int_to_ptr.vmem [resolvable:$true] %s209_s19  ;;  %s259_s27 = int_to_ptr.hbm [resolvable:$true] %s258_s27 }
  0x3c   : > { %p860_p2 = pneg %p1312_p1  ;;  %s252_s8 = scalar_lea.vmem [#allocation8], %s1248_s16 }
  0x3d   : > { %s260_s30 = sshll.u32 %s252_s8, 4  ;;  %s1159_s12 = smov 128   ;;  %s261_s30 = int_to_ptr.vmem [resolvable:$true] %s260_s30 }
  0x3e   : > { %p861_p3 = pnand %p860_p2, %p66_p9  ;;  %s1160_s14 = smov 8  }
  0x3f   : > { %s1019_s9 = sshra.s32 %s259_s27, 4  ;;  %s1026_s16 = scalar_lea.hbm %s1508_s2, 4  ;;  %s1020_s9 = int_to_ptr.hbm [resolvable:$true] %s1019_s9 }
  0x40   : > { %863 = dma.hbm_to_vmem [thread:$0]  (!%p861_p3), %s208_s20, 256, %s210_s19, [#allocation4], %s1159_s12, %s1159_s12, %s1160_s14  }
  0x41   : > { %s1021_s10 = scalar_lea.hbm %s1020_s9, 2  ;;  %p1027_p10 = scmp.lt.s32.totalorder %s1020_s9, %s1508_s2 }
  0x42   : > { %p1022_p4 = scmp.ne.s32.totalorder %s1020_s9, %s1021_s10  ;;  %p1028_p11 = scmp.lt.s32.totalorder %s1026_s16, %s1021_s10 }
  0x44   : > { %p1024_p6 = pnand %p1022_p4, %p933_p7  ;;  %p1029_p12 = por %p1028_p11, %p1027_p10 }
  0x46   : > { %p1025_p8 = pneg %p1024_p6 }
  0x48   : > { %p1030_p2 = pnand %p1029_p12, %p1025_p8 }
  0x4a   : > { %1033 = shalt.err (!%p1030_p2)
}
  0x4b   : > { %870 = dma.hbm_to_vmem [thread:$0]  (!%p1244_p5), %s259_s27, 32, %s261_s30, %s1252_s17  }
  0x4c   : > { %s843_s1 = sshll.u32 %s1153_s24, 8  ;;  %s290_s8 = scalar_lea.vmem [#allocation11], %s1235_s7 }
  0x4d   : > { %s295_s19 = scalar_lea.hbm %s1510_s4, %s843_s1  ;;  %s298_s11 = sshll.u32 %s290_s8, 4  ;;  %s299_s11 = int_to_ptr.vmem [resolvable:$true] %s298_s11 }
  0x4e   : > { %s296_s18 = sshll.u32 %s295_s19, 4  ;;  %s1056_s24 = scalar_lea.hbm %s1510_s4, 512  ;;  %s297_s18 = int_to_ptr.hbm [resolvable:$true] %s296_s18 }
  0x4f   : > { %s1049_s9 = sshra.s32 %s297_s18, 4  ;;  %s1050_s9 = int_to_ptr.hbm [resolvable:$true] %s1049_s9 }
  0x50   : > { %s1051_s10 = scalar_lea.hbm %s1050_s9, 256  ;;  %p1057_p8 = scmp.lt.s32.totalorder %s1050_s9, %s1510_s4 }
  0x51   : > { %p1052_p3 = scmp.ne.s32.totalorder %s1050_s9, %s1051_s10  ;;  %p1058_p10 = scmp.lt.s32.totalorder %s1056_s24, %s1051_s10 }
  0x53   : > { %p1054_p4 = pnand %p1052_p3, %p933_p7  ;;  %p1059_p11 = por %p1058_p10, %p1057_p8 }
  0x55   : > { %p1055_p6 = pneg %p1054_p4 }
  0x57   : > { %p1060_p12 = pnand %p1059_p11, %p1055_p6 }
  0x59   : > { %1063 = shalt.err (!%p1060_p12)
}
  0x5a   : > { %876 = dma.hbm_to_vmem [thread:$0]  (!%p1244_p5), %s297_s18, 4096, %s299_s11, %s1280_s23, %s1159_s12, %s1159_s12, %s1160_s14  }
  0x5b   : > { %310 = sbr.rel (%p1312_p1) target bundleno = 500 (0x1f4), region = 44 }
  0x60   : > { %1124 = dma.done.wait (%p66_p9), [#allocation4], 256  }
  0x61   : > { %1126 = vsyncadd (%p66_p9), [#allocation4], 4294967040  ;;  %s317_s7 = sand.u32 1, %s1295_s28   ;;  %s319_s13 = sand.u32 1, %s1145_s22  }
  0x62   : > { %s832_s15 = sshll.u32 %s319_s13, 8  ;;  %s318_s29 = scalar_lea.sflag [#allocation7], %s317_s7 }
  0x63   : > { %s1365_s1 = scalar_lea.vmem [#allocation6], %s832_s15 }
  0x64   : > { %1128 = dma.done.wait (%p1305_p0), %s318_s29, 4128  }
  0x65   : > { %1130 = vsyncadd (%p1305_p0), %s318_s29, 4294963168  ;;  %s1371_s23 = sshll.u32 %s319_s13, 1  ;;  %s338_s12 = scalar_lea.sflag [#allocation10], %s317_s7 }
  0x66   : > { %s331_s26 = scalar_lea.vmem [#allocation8], %s1371_s23  ;;  %s341_s14 = scalar_lea.vmem [#allocation9], %s1371_s23 }
  0x67   : > { %1132 = dma.done.wait (%p1305_p0), %s338_s12, 4128  }
  0x68   : > { %1134 = vsyncadd (%p1305_p0), %s338_s12, 4294963168  ;;  %s1379_s20 = scalar_lea.vmem [#allocation11], %s832_s15  ;;  %398 = sbr.rel (%p818_p13) target bundleno = 112 (0x70), region = 68 }
  0x6d   : > { %v1161_v0 = vmov 0.0  }
  0x6e   : > { %399 = vst [vmem:[#allocation2] sm:$0xff] %v1161_v0 }
  0x6f   : > { %400 = vst [vmem:[#allocation2 + $0x8] sm:$0xff] %v1161_v0 }
  0x70 PF: > { %v433_v1 = vld [vmem:[%s1365_s1 + $0xf0] sm:$0xff]  ;;  %v434_v2 = vld [vmem:[%s1365_s1 + $0xf8] sm:$0xff]  ;;  %v431_v3 = vld [vmem:[%s1365_s1 + $0xe0] sm:$0xff]  ;;  %vm547_vm5 = vcmask 1040384   ;;  %p837_p5 = scmp.ne.s32.totalorder %s1295_s28, 1 }
  0x71   : > { %435 = vmatpush.msra.mxu0 %v433_v1  ;;  %458 = vmatpush.msra.mxu1 %v434_v2  ;;  %v432_v4 = vld [vmem:[%s1365_s1 + $0xe8] sm:$0xff]  ;;  %v429_v5 = vld [vmem:[%s1365_s1 + $0xd0] sm:$0xff]  ;;  %v430_v6 = vld [vmem:[%s1365_s1 + $0xd8] sm:$0xff] }
  0x72   : > { %v427_v7 = vld [vmem:[%s1365_s1 + $0xc0] sm:$0xff]  ;;  %v428_v8 = vld [vmem:[%s1365_s1 + $0xc8] sm:$0xff]  ;;  %v425_v9 = vld [vmem:[%s1365_s1 + $0xb0] sm:$0xff] }
  0x73   : > { %436 = vmatpush.msra.mxu0 %v431_v3  ;;  %459 = vmatpush.msra.mxu1 %v432_v4  ;;  %v426_v10 = vld [vmem:[%s1365_s1 + $0xb8] sm:$0xff]  ;;  %v423_v11 = vld [vmem:[%s1365_s1 + $0xa0] sm:$0xff]  ;;  %v424_v12 = vld [vmem:[%s1365_s1 + $0xa8] sm:$0xff] }
  0x74   : > { %v421_v13 = vld [vmem:[%s1365_s1 + $0x90] sm:$0xff]  ;;  %v422_v14 = vld [vmem:[%s1365_s1 + $0x98] sm:$0xff]  ;;  %v419_v15 = vld [vmem:[%s1365_s1 + $0x80] sm:$0xff] }
  0x75   : > { %437 = vmatpush.msra.mxu0 %v429_v5  ;;  %460 = vmatpush.msra.mxu1 %v430_v6  ;;  %v420_v16 = vld [vmem:[%s1365_s1 + $0x88] sm:$0xff]  ;;  %v417_v17 = vld [vmem:[%s1365_s1 + $0x70] sm:$0xff]  ;;  %v418_v18 = vld [vmem:[%s1365_s1 + $0x78] sm:$0xff] }
  0x76   : > { %v415_v19 = vld [vmem:[%s1365_s1 + $0x60] sm:$0xff]  ;;  %v416_v20 = vld [vmem:[%s1365_s1 + $0x68] sm:$0xff]  ;;  %v413_v21 = vld [vmem:[%s1365_s1 + $0x50] sm:$0xff] }
  0x77   : > { %438 = vmatpush.msra.mxu0 %v427_v7  ;;  %461 = vmatpush.msra.mxu1 %v428_v8  ;;  %v414_v22 = vld [vmem:[%s1365_s1 + $0x58] sm:$0xff]  ;;  %v411_v23 = vld [vmem:[%s1365_s1 + $0x40] sm:$0xff]  ;;  %v412_v24 = vld [vmem:[%s1365_s1 + $0x48] sm:$0xff] }
  0x78   : > { %v409_v25 = vld [vmem:[%s1365_s1 + $0x30] sm:$0xff]  ;;  %v410_v26 = vld [vmem:[%s1365_s1 + $0x38] sm:$0xff]  ;;  %v407_v27 = vld [vmem:[%s1365_s1 + $0x20] sm:$0xff] }
  0x79   : > { %439 = vmatpush.msra.mxu0 %v425_v9  ;;  %462 = vmatpush.msra.mxu1 %v426_v10  ;;  %v408_v28 = vld [vmem:[%s1365_s1 + $0x28] sm:$0xff]  ;;  %v405_v29 = vld [vmem:[%s1365_s1 + $0x10] sm:$0xff]  ;;  %v406_v30 = vld [vmem:[%s1365_s1 + $0x18] sm:$0xff] }
  0x7a   : > { %v403_v31 = vld [vmem:[%s1365_s1] sm:$0xff]  ;;  %v404_v32 = vld [vmem:[%s1365_s1 + $0x8] sm:$0xff]  ;;  %v401_v33 = vld [vmem:[#allocation3] sm:$0xff] }
  0x7b   : > { %440 = vmatpush.msra.mxu0 %v423_v11  ;;  %463 = vmatpush.msra.mxu1 %v424_v12  ;;  %v402_v34 = vld [vmem:[#allocation3 + $0x8] sm:$0xff]  ;;  %v599_v37 = vld [vmem:[%s1379_s20 + $0x78] sm:$0xff]  ;;  %v597_v49 = vld [vmem:[%s1379_s20 + $0x68] sm:$0xff] }
  0x7c   : > { %v615_v38 = vld [vmem:[%s1379_s20 + $0xf8] sm:$0xff]  ;;  %616 = vmatpush.msra.mxu2 %v599_v37  ;;  %v598_v43 = vld [vmem:[%s1379_s20 + $0x70] sm:$0xff]  ;;  %v613_v50 = vld [vmem:[%s1379_s20 + $0xe8] sm:$0xff] }
  0x7d   : > { %441 = vmatpush.msra.mxu0 %v421_v13  ;;  %464 = vmatpush.msra.mxu1 %v422_v14  ;;  %v614_v44 = vld [vmem:[%s1379_s20 + $0xf0] sm:$0xff]  ;;  %v596_v55 = vld [vmem:[%s1379_s20 + $0x60] sm:$0xff]  ;;  %v595_v61 = vld [vmem:[%s1379_s20 + $0x58] sm:$0xff] }
  0x7e   : > { %639 = vmatpush.msra.mxu3 %v615_v38  ;;  %617 = vmatpush.msra.mxu2 %v598_v43  ;;  %v612_v56 = vld [vmem:[%s1379_s20 + $0xe0] sm:$0xff]  ;;  %v611_v62 = vld [vmem:[%s1379_s20 + $0xd8] sm:$0xff]  ;;  %v594_v3 = vld [vmem:[%s1379_s20 + $0x50] sm:$0xff] }
  0x7f   : > { %442 = vmatpush.msra.mxu0 %v419_v15  ;;  %465 = vmatpush.msra.mxu1 %v420_v16  ;;  %v610_v4 = vld [vmem:[%s1379_s20 + $0xd0] sm:$0xff]  ;;  %v593_v9 = vld [vmem:[%s1379_s20 + $0x48] sm:$0xff]  ;;  %v592_v15 = vld [vmem:[%s1379_s20 + $0x40] sm:$0xff] }
  0x80   : > { %640 = vmatpush.msra.mxu3 %v614_v44  ;;  %618 = vmatpush.msra.mxu2 %v597_v49  ;;  %v609_v10 = vld [vmem:[%s1379_s20 + $0xc8] sm:$0xff]  ;;  %v608_v16 = vld [vmem:[%s1379_s20 + $0xc0] sm:$0xff]  ;;  %v587_v43 = vld [vmem:[%s1379_s20 + $0x18] sm:$0xff] }
  0x81   : > { %443 = vmatpush.msra.mxu0 %v417_v17  ;;  %466 = vmatpush.msra.mxu1 %v418_v18  ;;  %v585_v49 = vld [vmem:[%s1379_s20 + $0x8] sm:$0xff] }
  0x82   : > { %641 = vmatpush.msra.mxu3 %v613_v50  ;;  %619 = vmatpush.msra.mxu2 %v596_v55  ;;  %v601_v50 = vld [vmem:[%s1379_s20 + $0x88] sm:$0xff] }
  0x83   : > { %444 = vmatpush.msra.mxu0 %v415_v19  ;;  %467 = vmatpush.msra.mxu1 %v416_v20 }
  0x84   : > { %642 = vmatpush.msra.mxu3 %v612_v56  ;;  %620 = vmatpush.msra.mxu2 %v595_v61 }
  0x85   : > { %445 = vmatpush.msra.mxu0 %v413_v21  ;;  %468 = vmatpush.msra.mxu1 %v414_v22  ;;  %v591_v21 = vld [vmem:[%s1379_s20 + $0x38] sm:$0xff] }
  0x86   : > { %643 = vmatpush.msra.mxu3 %v611_v62  ;;  %621 = vmatpush.msra.mxu2 %v594_v3  ;;  %v607_v22 = vld [vmem:[%s1379_s20 + $0xb8] sm:$0xff] }
  0x87   : > { %446 = vmatpush.msra.mxu0 %v411_v23  ;;  %469 = vmatpush.msra.mxu1 %v412_v24 }
  0x88   : > { %644 = vmatpush.msra.mxu3 %v610_v4  ;;  %622 = vmatpush.msra.mxu2 %v593_v9 }
  0x89   : > { %447 = vmatpush.msra.mxu0 %v409_v25  ;;  %470 = vmatpush.msra.mxu1 %v410_v26 }
  0x8a   : > { %645 = vmatpush.msra.mxu3 %v609_v10  ;;  %623 = vmatpush.msra.mxu2 %v592_v15 }
  0x8b   : > { %448 = vmatpush.msra.mxu0 %v407_v27  ;;  %471 = vmatpush.msra.mxu1 %v408_v28  ;;  %v590_v27 = vld [vmem:[%s1379_s20 + $0x30] sm:$0xff] }
  0x8c   : > { %646 = vmatpush.msra.mxu3 %v608_v16  ;;  %624 = vmatpush.msra.mxu2 %v591_v21  ;;  %v606_v28 = vld [vmem:[%s1379_s20 + $0xb0] sm:$0xff] }
  0x8d   : > { %449 = vmatpush.msra.mxu0 %v405_v29  ;;  %472 = vmatpush.msra.mxu1 %v406_v30 }
  0x8e   : > { %647 = vmatpush.msra.mxu3 %v607_v22  ;;  %625 = vmatpush.msra.mxu2 %v590_v27 }
  0x8f   : > { %450 = vmatpush.msra.mxu0 %v403_v31  ;;  %473 = vmatpush.msra.mxu1 %v404_v32 }
  0x90   : > { %451 = vmatmul.f32.vlgmr.msra.gmra.mxu0 %v401_v33  ;;  %474 = vmatmul.f32.vlgmr.msra.gmra.mxu1 %v401_v33  ;;  %v589_v33 = vld [vmem:[%s1379_s20 + $0x28] sm:$0xff] }
  0x91   : > { %648 = vmatpush.msra.mxu3 %v606_v28  ;;  %626 = vmatpush.msra.mxu2 %v589_v33  ;;  %v583_v33 = vld [vmem:[#allocation2 + $0x8] sm:$0xff] }
  0x98   : > { %454 = vmatmul.f32.gmra.mxu0 %v402_v34  ;;  %477 = vmatmul.f32.gmra.mxu1 %v402_v34  ;;  %v605_v34 = vld [vmem:[%s1379_s20 + $0xa8] sm:$0xff] }
  0x99   : > { %649 = vmatpush.msra.mxu3 %v605_v34 }
 0x10d   : > { %v1415_v35 = vpop.f32.mrf.mxu0  ;;  %v1417_v36 = vpop.f32.mrf.mxu1 }
 0x10e   : > { %v497_v39 = vmul.f32 %v1415_v35, %v1415_v35  ;;  %v498_v40 = vmul.f32 %v1417_v36, %v1417_v36 }
 0x115   : > { %v1425_v41 = vpop.f32.mrf.mxu0  ;;  %v1427_v42 = vpop.f32.mrf.mxu1 }
 0x116   : > { %v481_v45 = vadd.f32 %v1425_v41, %v1415_v35  ;;  %v499_v46 = vmul.f32 %v1425_v41, %v1425_v41  ;;  %v488_v47 = vadd.f32 %v1427_v42, %v1417_v36  ;;  %v500_v48 = vmul.f32 %v1427_v42, %v1427_v42 }
 0x118   : > { %v482_v51 = vrot.slane %v481_v45, 4  ;;  %v501_v52 = vadd.f32 %v499_v46, %v497_v39  ;;  %v489_v53 = vrot.slane %v488_v47, 4  ;;  %v508_v54 = vadd.f32 %v500_v48, %v498_v40  ;;  %v588_v39 = vld [vmem:[%s1379_s20 + $0x20] sm:$0xff]  ;;  %v603_v46 = vld [vmem:[%s1379_s20 + $0x98] sm:$0xff]  ;;  %v602_v48 = vld [vmem:[%s1379_s20 + $0x90] sm:$0xff] }
 0x119   : > { %v604_v40 = vld [vmem:[%s1379_s20 + $0xa0] sm:$0xff]  ;;  %627 = vmatpush.msra.mxu2 %v588_v39 }
 0x11a   : > { %v483_v57 = vadd.f32 %v482_v51, %v481_v45  ;;  %v502_v58 = vrot.slane %v501_v52, 4  ;;  %v490_v59 = vadd.f32 %v489_v53, %v488_v47  ;;  %v509_v60 = vrot.slane %v508_v54, 4  ;;  %650 = vmatpush.msra.mxu3 %v604_v40  ;;  %v586_v47 = vld [vmem:[%s1379_s20 + $0x10] sm:$0xff]  ;;  %v584_v51 = vld [vmem:[%s1379_s20] sm:$0xff] }
 0x11b   : > { %628 = vmatpush.msra.mxu2 %v587_v43 }
 0x11c   : > { %v484_v63 = vrot.slane %v483_v57, 2  ;;  %v503_v0 = vadd.f32 %v502_v58, %v501_v52  ;;  %v491_v1 = vrot.slane %v490_v59, 2  ;;  %v510_v2 = vadd.f32 %v509_v60, %v508_v54  ;;  %651 = vmatpush.msra.mxu3 %v603_v46  ;;  %v600_v52 = vld [vmem:[%s1379_s20 + $0x80] sm:$0xff] }
 0x11d   : > { %629 = vmatpush.msra.mxu2 %v586_v47 }
 0x11e   : > { %v485_v5 = vadd.f32 %v484_v63, %v483_v57  ;;  %v504_v6 = vrot.slane %v503_v0, 2  ;;  %v492_v7 = vadd.f32 %v491_v1, %v490_v59  ;;  %v511_v8 = vrot.slane %v510_v2, 2  ;;  %652 = vmatpush.msra.mxu3 %v602_v48 }
 0x11f   : > { %630 = vmatpush.msra.mxu2 %v585_v49 }
 0x120   : > { %v486_v11 = vrot.slane %v485_v5, 1  ;;  %v505_v12 = vadd.f32 %v504_v6, %v503_v0  ;;  %v493_v13 = vrot.slane %v492_v7, 1  ;;  %v512_v14 = vadd.f32 %v511_v8, %v510_v2  ;;  %653 = vmatpush.msra.mxu3 %v601_v50  ;;  %v521_v2 = vld [vmem:[%s331_s26] sm:$0x3] }
 0x121   : > { %631 = vmatpush.msra.mxu2 %v584_v51 }
 0x122   : > { %v487_v17 = vadd.f32 %v486_v11, %v485_v5  ;;  %v506_v18 = vrot.slane %v505_v12, 1  ;;  %v494_v19 = vadd.f32 %v493_v13, %v492_v7  ;;  %v513_v20 = vrot.slane %v512_v14, 1  ;;  %654 = vmatpush.msra.mxu3 %v600_v52  ;;  %v551_v11 = vld [vmem:[%s341_s14] sm:$0x3] }
 0x124   : > { %v1453_v23 = vmul.f32 0.0625, %v487_v17  ;;  %v507_v24 = vadd.f32 %v506_v18, %v505_v12  ;;  %v1455_v25 = vmul.f32 0.0625, %v494_v19  ;;  %v514_v26 = vadd.f32 %v513_v20, %v512_v14 }
 0x126   : > { %v515_v29 = vmul.f32 0.0625, %v507_v24  ;;  %v517_v30 = vmul.f32 %v1453_v23, %v1453_v23  ;;  %v516_v31 = vmul.f32 0.0625, %v514_v26  ;;  %v518_v32 = vmul.f32 %v1455_v25, %v1455_v25 }
 0x128   : > { %v519_v37 = vsub.f32 %v515_v29, %v517_v30  ;;  %v520_v38 = vsub.f32 %v516_v31, %v518_v32  ;;  %v582_v29 = vld [vmem:[#allocation2] sm:$0xff] }
 0x12a   : > { %v522_v44 = vadd.f32 1e-05, %v519_v37  ;;  %v523_v45 = vadd.f32 1e-05, %v520_v38 }
 0x12c   : > { %924 = vrsqrt.f32 %v522_v44  ;;  %vm540_vm2 = vweird.f32 %v523_v45  ;;  %vm530_vm4 = vweird.f32 %v522_v44 }
 0x12d   : > { %926 = vrsqrt.f32 %v523_v45 }
 0x132   : > { %v925_v53 = vpop.eup %924 }
 0x133   : > { %v927_v54 = vpop.eup %926  ;;  %v525_v55 = vmul.f32 %v925_v53, %v522_v44  ;;  %vm531_vm1 = vweird.f32 %v925_v53 }
 0x134   : > { %v535_v56 = vmul.f32 %v927_v54, %v523_v45  ;;  %vm541_vm0 = vweird.f32 %v927_v54  ;;  %vm532_vm6 = vmor %vm530_vm4, %vm531_vm1 }
 0x135   : > { %v526_v57 = vmul.f32 %v925_v53, %v525_v55  ;;  %vm542_vm3 = vmor %vm540_vm2, %vm541_vm0 }
 0x136   : > { %v536_v58 = vmul.f32 %v927_v54, %v535_v56 }
 0x137   : > { %v527_v59 = vmul.f32 0.5, %v526_v57 }
 0x138   : > { %v537_v60 = vmul.f32 0.5, %v536_v58 }
 0x139   : > { %v528_v61 = vsub.f32 1.5, %v527_v59 }
 0x13a   : > { %v538_v62 = vsub.f32 1.5, %v537_v60 }
 0x13b   : > { %v529_v63 = vmul.f32 %v925_v53, %v528_v61 }
 0x13c   : > { %v539_v0 = vmul.f32 %v927_v54, %v538_v62 }
 0x13d   : > { %v533_v4 = vsel %vm532_vm6, %v925_v53, %v529_v63 }
 0x13e   : > { %v543_v1 = vsel %vm542_vm3, %v927_v54, %v539_v0 }
 0x13f   : > { %v546_v3 = vrot.slane %v543_v1, 7 }
 0x141   : > { %v548_v5 = vsel %vm547_vm5, %v533_v4, %v546_v3 }
 0x142   : > { %v550_v6 = vmul.f32 %v548_v5, %v521_v2 }
 0x144   : > { %v554_v7 = vperm.slane %v550_v6, 1  ;;  %v553_v8 = vperm.slane %v550_v6, 0 }
 0x146   : > { %v558_v9 = vmul.f32 %v554_v7, %v1455_v25  ;;  %v557_v12 = vmul.f32 %v553_v8, %v1453_v23  ;;  %v565_v15 = vmul.f32 %v553_v8, %v1415_v35  ;;  %v566_v17 = vmul.f32 %v554_v7, %v1417_v36 }
 0x147   : > { %v568_v24 = vmul.f32 %v554_v7, %v1427_v42  ;;  %v567_v25 = vmul.f32 %v553_v8, %v1425_v41 }
 0x148   : > { %v561_v10 = vrot.slane %v558_v9, 7 }
 0x14a   : > { %v562_v13 = vsel %vm547_vm5, %v557_v12, %v561_v10 }
 0x14b   : > { %v564_v14 = vsub.f32 %v551_v11, %v562_v13 }
 0x14d   : > { %v570_v16 = vperm.slane %v564_v14, 0  ;;  %v571_v18 = vperm.slane %v564_v14, 1 }
 0x14f   : > { %v574_v19 = vadd.f32 %v570_v16, %v565_v15  ;;  %v575_v20 = vadd.f32 %v571_v18, %v566_v17  ;;  %v576_v26 = vadd.f32 %v570_v16, %v567_v25  ;;  %v577_v23 = vadd.f32 %v571_v18, %v568_v24 }
 0x151   : > { %v578_v21 = vmax.f32 %v574_v19, 0.0  ;;  %v579_v22 = vmax.f32 %v575_v20, 0.0  ;;  %v580_v27 = vmax.f32 %v576_v26, 0.0  ;;  %v581_v28 = vmax.f32 %v577_v23, 0.0 }
 0x153   : > { %632 = vmatmul.f32.vlgmr.msra.gmra.mxu2 %v578_v21  ;;  %655 = vmatmul.f32.vlgmr.msra.gmra.mxu3 %v579_v22 }
 0x15b   : > { %635 = vmatmul.f32.gmra.mxu2 %v580_v27  ;;  %658 = vmatmul.f32.gmra.mxu3 %v581_v28 }
 0x1d6   : > { %v633_v35 = vpop.f32.mrf.mxu2  ;;  %v656_v36 = vpop.f32.mrf.mxu3 }
 0x1d7   : > { %v657_v30 = vadd.f32 %v656_v36, %v633_v35 }
 0x1d9   : > { %v662_v31 = vadd.f32 %v657_v30, %v582_v29 }
 0x1db   : > { %664 = vst [vmem:[#allocation2] sm:$0xff] %v662_v31 }
 0x1de   : > { %v636_v32 = vpop.f32.mrf.mxu2  ;;  %v659_v34 = vpop.f32.mrf.mxu3 }
 0x1df   : > { %v660_v42 = vadd.f32 %v659_v34, %v636_v32  ;;  %669 = sbr.rel (%p837_p5) target bundleno = 494 (0x1ee), region = 72 }
 0x1e1   : > { %v663_v37 = vadd.f32 %v660_v42, %v583_v33 }
 0x1e3   : > { %665 = vst [vmem:[#allocation2 + $0x8] sm:$0xff] %v663_v37 }
 0x1e4   : > { %v670_v41 = vld [vmem:[#allocation2] sm:$0xff] }
 0x1e5   : > { %v928_v38 = vld [vmem:[%s1511_s5] ss:$0 sm:$0xff] }
 0x1e6   : > { %v676_v40 = vadd.f32 %v928_v38, %v670_v41 }
 0x1e8   : > { %678 = vst [vmem:[#allocation12] sm:$0xff] %v676_v40 }
 0x1ea   : > { %v671_v39 = vld [vmem:[#allocation2 + $0x8] sm:$0xff] }
 0x1eb   : > { %v677_v43 = vadd.f32 %v928_v38, %v671_v39 }
 0x1ed   : > { %679 = vst [vmem:[#allocation12 + $0x8] sm:$0xff] %v677_v43 }
 0x1ee PF: > { %p880_p7 = scmp.eq.s32.totalorder %s1295_s28, 1  ;;  %s1162_s19 = smov [#allocation12]  }
 0x1ef   : > { %s685_s8 = sshll.u32 %s1162_s19, 4  ;;  %s687_s9 = sshll.u32 %s1512_s6, 4  ;;  %s686_s8 = int_to_ptr.vmem [resolvable:$true] %s685_s8  ;;  %s688_s9 = int_to_ptr.hbm [resolvable:$true] %s687_s9 }
 0x1f0   : > { %s1163_s10 = smov 128   ;;  %s1164_s16 = smov 8  }
 0x1f1   : > { %857 = dma.vmem_to_hbm [thread:$0]  (%p880_p7), %s686_s8, 256, %s688_s9, [#allocation5], %s1163_s10, %s1163_s10, %s1164_s16  }
 0x1f2   : > { %1136 = dma.done.wait (%p880_p7), [#allocation5], 256  }
 0x1f3   : > { %1138 = vsyncadd (%p880_p7), [#allocation5], 4294967040 }
 0x1f4 PF: > { %s1526_s24 = sld [smem:[#allocation18_spill]]  ;;  %s1529_s21 = smov %s1145_s22 }
 0x1f5   : > { %s1527_s17 = sld [smem:[#allocation17_spill]] }
 0x1f6   : > { %s1528_s23 = sld [smem:[#allocation19_spill]] }
 0x1fa   : > { %p21_p9 = scmp.ge.s32.totalorder %s1526_s24, 4  }
 0x1fb   : > { %s1530_s22 = smov %s1527_s17 }
 0x1fc   :  { %23 = sbr.rel (!%p21_p9) target bundleno = 9 (0x9), region = 129 }
 0x201   :  { %704 = vsyncpa [#allocation4], 1 }
 0x202   :  { %706 = vsyncpa [#allocation4 + $0x1], 1 }
 0x203   :  { %707 = vsyncpa [#allocation7], 1 }
 0x204   :  { %709 = vsyncpa [#allocation7 + $0x1], 1 }
 0x205   :  { %710 = vsyncpa [#allocation10], 1 }
 0x206   :  { %712 = vsyncpa [#allocation10 + $0x1], 1 }
 0x207   :  { %713 = vsyncpa [#allocation5], 1 }
 0x208   :  { %715 = vsyncpa [#allocation5 + $0x1], 1 }

</bundles_post_ra>
